<compile_context>
chip_gen: v5e
topology: v5e:2x2
jax: 0.10.0
libtpu: 0.0.40
codegen_flags: <defaults>
</compile_context>

<pallas_src>
import functools

import jax
import jax.numpy as jnp
from jax import lax
from jax.experimental import pallas as pl
from jax.experimental.pallas import tpu as pltpu

LN_EPS = 1e-5   # torch.nn.LayerNorm default
LANE = 128
SUBLANE = 8


def _round_up(x, m):
    return (x + m - 1) // m * m


def _make_mlp_kernel(n_hidden, hidden_true_dims):
    """Fused MLP kernel: n_hidden x (Linear+LN+ReLU) + output Linear.

    hidden_true_dims[l] is the TRUE (unpadded) width after hidden Linear l,
    used for LayerNorm statistics and lane masking of the padded width.
    """

    def kernel(*refs):
        x_ref = refs[0]
        o_ref = refs[-1]
        params = refs[1:-1]  # n_hidden * (W, b, gamma, beta) + (W_out, b_out)

        h = x_ref[...]  # bf16, true input width

        for l in range(n_hidden):
            w_ref, b_ref, g_ref, be_ref = params[4 * l: 4 * l + 4]
            d_true = hidden_true_dims[l]
            d_pad = w_ref.shape[1]
            inv_d = jnp.float32(1.0 / d_true)

            # Linear on the MXU: bf16 operands, f32 accumulation.
            h = jnp.dot(h.astype(jnp.bfloat16), w_ref[...],
                        preferred_element_type=jnp.float32)
            h = h + b_ref[...]

            # Two-pass LayerNorm over the TRUE feature width (f32).
            # Padded lanes of h are exactly 0 (zero-padded weight cols / bias),
            # so the plain lane sum equals the true sum; the centered term is
            # masked so padded lanes contribute nothing to the variance.
            mu = jnp.sum(h, axis=-1, keepdims=True) * inv_d
            diff = h - mu
            if d_pad != d_true:
                lane = lax.broadcasted_iota(jnp.int32, (1, d_pad), 1)
                diff = jnp.where(lane < d_true, diff, 0.0)
            var = jnp.sum(diff * diff, axis=-1, keepdims=True) * inv_d
            h = diff * lax.rsqrt(var + LN_EPS)
            # padded lanes: diff == 0 -> 0 * gamma + beta_pad(=0) == 0
            h = h * g_ref[...] + be_ref[...]
            h = jnp.maximum(h, 0.0)   # ReLU

        w_out_ref, b_out_ref = params[4 * n_hidden:]
        out = jnp.dot(h.astype(jnp.bfloat16), w_out_ref[...],
                      preferred_element_type=jnp.float32)
        o_ref[...] = (out + b_out_ref[...]).astype(o_ref.dtype)

    return kernel


def init_params(key, num_inputs, num_outputs, hidden_size):
    """Deterministic synthetic parameters matching the module's shapes.

    Linear weights kept in (in, out) layout (transpose of torch (out, in)).
    LayerNorm gamma=1, beta=0 (torch defaults).  All f32, unpadded ("true"
    parameters, used by the pure-JAX reference).
    """
    params = []
    dims = [num_inputs] + list(hidden_size)
    for l in range(len(hidden_size)):
        fan_in, fan_out = dims[l], dims[l + 1]
        key, kw, kb = jax.random.split(key, 3)
        scale = 1.0 / jnp.sqrt(fan_in)
        w = jax.random.uniform(kw, (fan_in, fan_out), jnp.float32, -scale, scale)
        b = jax.random.uniform(kb, (1, fan_out), jnp.float32, -scale, scale)
        gamma = jnp.ones((1, fan_out), jnp.float32)
        beta = jnp.zeros((1, fan_out), jnp.float32)
        params += [w, b, gamma, beta]
    fan_in = hidden_size[-1]
    key, kw, kb = jax.random.split(key, 3)
    scale = 1.0 / jnp.sqrt(fan_in)
    w_out = jax.random.uniform(kw, (fan_in, num_outputs), jnp.float32, -scale, scale)
    b_out = jax.random.uniform(kb, (1, num_outputs), jnp.float32, -scale, scale)
    params += [w_out, b_out]
    return params


def pad_params(params, num_inputs, num_outputs, hidden_size):
    """Zero-pad HIDDEN feature dims to multiples of 128; weights -> bf16.

    Input (K of layer 0) and output (N of the final layer) keep their TRUE
    widths.  All padding is zeros; the kernel relies on zero-padded weight
    K-rows / N-cols and zero-padded bias/beta, asserted below.
    """
    n_hidden = len(hidden_size)
    dims = [num_inputs] + list(hidden_size) + [num_outputs]
    pdims = [num_inputs] + [_round_up(d, LANE) for d in hidden_size] + [num_outputs]
    # NOTE: pad granularity could be raised to 256 for K/N >= 256 on v6e/v7x
    # (MXU is 2x256x256 there); irrelevant for the mem-bound default config.

    padded = []
    for l in range(n_hidden):
        w, b, g, be = params[4 * l: 4 * l + 4]
        din, dout = dims[l], dims[l + 1]
        dinp, doutp = pdims[l], pdims[l + 1]
        w_p = jnp.pad(w, ((0, dinp - din), (0, doutp - dout))).astype(jnp.bfloat16)
        b_p = jnp.pad(b, ((0, 0), (0, doutp - dout)))
        g_p = jnp.pad(g, ((0, 0), (0, doutp - dout)))
        be_p = jnp.pad(be, ((0, 0), (0, doutp - dout)))
        # Guard the zero-padding invariant the kernel relies on.
        if dinp > din:
            assert float(jnp.abs(w_p[din:, :]).sum()) == 0.0
        if doutp > dout:
            assert float(jnp.abs(w_p[:, dout:]).sum()) == 0.0
            assert float(jnp.abs(b_p[:, dout:]).sum()) == 0.0
            assert float(jnp.abs(be_p[:, dout:]).sum()) == 0.0
        padded += [w_p, b_p, g_p, be_p]

    w_out, b_out = params[4 * n_hidden:]
    din, dinp = dims[-2], pdims[-2]
    w_out_p = jnp.pad(w_out, ((0, dinp - din), (0, 0))).astype(jnp.bfloat16)
    if dinp > din:
        assert float(jnp.abs(w_out_p[din:, :]).sum()) == 0.0
    padded += [w_out_p, b_out]
    return padded


def evolvable_mlp_forward(x, padded_params, num_inputs, num_outputs, hidden_size,
                          block_batch=1024, single_buffer_params=True):
    """One pallas_call running the whole fused MLP, batch-tiled over the grid."""
    batch = x.shape[0]
    n_hidden = len(hidden_size)

    # Batch tile: multiple of 8 sublanes, capped at block_batch.
    b_rounded = _round_up(batch, SUBLANE)
    tm = min(block_batch, b_rounded)
    # Guarantee >= 2 grid steps when the batch allows it: v7x has 2 TensorCores
    # (the "parallel" axis can't shard with grid=(1,)) and >=2 steps also gives
    # DMA/compute pipeline overlap.
    if tm == b_rounded and b_rounded >= 2 * SUBLANE:
        tm = _round_up((b_rounded + 1) // 2, SUBLANE)
    b_pad = _round_up(batch, tm)
    grid = (b_pad // tm,)

    # Only the batch dim is padded (cheap).  x keeps its TRUE feature width and
    # is fed as bf16 (the MXU consumes bf16 operands anyway).
    x_p = x.astype(jnp.bfloat16)
    if b_pad != batch:
        x_p = jnp.pad(x_p, ((0, b_pad - batch), (0, 0)))

    kernel = _make_mlp_kernel(n_hidden, list(hidden_size))

    x_spec = pl.BlockSpec((tm, num_inputs), lambda i: (i, 0))
    out_spec = pl.BlockSpec((tm, num_outputs), lambda i: (i, 0))

    param_mode = pl.Buffered(1) if single_buffer_params else None

    def const_spec(p):
        nd = p.ndim
        if param_mode is None:
            return pl.BlockSpec(p.shape, lambda i, _nd=nd: (0,) * _nd)
        # Constant block index -> single-buffer the resident parameters.
        return pl.BlockSpec(p.shape, lambda i, _nd=nd: (0,) * _nd,
                            pipeline_mode=param_mode)

    in_specs = [x_spec] + [const_spec(p) for p in padded_params]
    out_shape = jax.ShapeDtypeStruct((b_pad, num_outputs), jnp.float32)

    # VMEM budget: double-buffered x/out tiles + resident params (+ headroom).
    io_bytes = 2 * tm * (num_inputs * 2 + num_outputs * 4)
    param_bytes = sum(int(p.size) * p.dtype.itemsize for p in padded_params)
    param_mult = 1 if single_buffer_params else 2
    vmem_limit = int(io_bytes + param_mult * param_bytes + (8 << 20))
    vmem_limit = min(max(vmem_limit, 8 << 20), 40 << 20)   # 40 MiB: v7x-safe

    out = pl.pallas_call(
        kernel,
        out_shape=out_shape,
        grid_spec=pltpu.PrefetchScalarGridSpec(
            num_scalar_prefetch=0,
            grid=grid,
            in_specs=in_specs,
            out_specs=out_spec,
        ),
        compiler_params=pltpu.CompilerParams(
            dimension_semantics=("parallel",),
            vmem_limit_bytes=vmem_limit,
        ),
    )(x_p, *padded_params)

    if b_pad != batch:
        out = out[:batch]
    return out


def reference_forward(x, params, n_hidden):
    """Pure-JAX f32 reference of the same forward pass."""
    h = x.astype(jnp.float32)
    for l in range(n_hidden):
        w, b, g, be = params[4 * l: 4 * l + 4]
        h = h @ w + b
        mu = jnp.mean(h, axis=-1, keepdims=True)
        var = jnp.mean((h - mu) ** 2, axis=-1, keepdims=True)
        h = (h - mu) / jnp.sqrt(var + LN_EPS)
        h = h * g + be
        h = jnp.maximum(h, 0.0)
    w_out, b_out = params[4 * n_hidden:]
    return h @ w_out + b_out


if __name__ == "__main__":
    # Small config consistent with the module:
    # EvolvableMLP(num_inputs=32, num_outputs=8, hidden_size=[64, 64]),
    # non-rainbow default path.
    num_inputs = 32
    num_outputs = 8
    hidden_size = [64, 64]
    batch = 8

    key = jax.random.PRNGKey(0)
    key, kx, kp = jax.random.split(key, 3)
    x = jax.random.normal(kx, (batch, num_inputs), jnp.float32)
    params = init_params(kp, num_inputs, num_outputs, hidden_size)
    padded_params = pad_params(params, num_inputs, num_outputs, hidden_size)

    base_kwargs = dict(num_inputs=num_inputs, num_outputs=num_outputs,
                       hidden_size=hidden_size)
    try:
        fwd = jax.jit(functools.partial(evolvable_mlp_forward,
                                        single_buffer_params=True, **base_kwargs))
        out = fwd(x, padded_params)
        jax.block_until_ready(out)
    except Exception:
        # Fallback for jax builds without BlockSpec pipeline_mode support:
        # default double-buffered parameters (correctness identical).
        fwd = jax.jit(functools.partial(evolvable_mlp_forward,
                                        single_buffer_params=False, **base_kwargs))
        out = fwd(x, padded_params)
        jax.block_until_ready(out)

    ref = reference_forward(x, params, len(hidden_size))
    assert out.shape == (batch, num_outputs)
    # bf16 matmul operands / bf16 x -> loosened tolerance vs. the f32 reference.
    assert jnp.allclose(out, ref, atol=5e-2, rtol=5e-2), "mismatch vs reference"

    print("KERNEL_OK")
</pallas_src>

<mosaic_0001>
module attributes {stable_mosaic.version = 11 : i64} {
  func.func @kernel(%arg0: i32, %arg1: memref<8x32xbf16, #tpu.memory_space<vmem>>, %arg2: memref<32x128xbf16, #tpu.memory_space<vmem>>, %arg3: memref<1x128xf32, #tpu.memory_space<vmem>>, %arg4: memref<1x128xf32, #tpu.memory_space<vmem>>, %arg5: memref<1x128xf32, #tpu.memory_space<vmem>>, %arg6: memref<128x128xbf16, #tpu.memory_space<vmem>>, %arg7: memref<1x128xf32, #tpu.memory_space<vmem>>, %arg8: memref<1x128xf32, #tpu.memory_space<vmem>>, %arg9: memref<1x128xf32, #tpu.memory_space<vmem>>, %arg10: memref<128x8xbf16, #tpu.memory_space<vmem>>, %arg11: memref<1x8xf32, #tpu.memory_space<vmem>>, %arg12: memref<8x8xf32, #tpu.memory_space<vmem>>) attributes {dimension_semantics = [#tpu.dimension_semantics<parallel>], iteration_bounds = array<i64: 1>, scalar_prefetch = 0 : i64, scratch_operands = 0 : i64, tpu.core_type = #tpu.core_type<tc>, window_params = [{transform_indices = @transform_0, window_bounds = array<i64: 8, 32>}, {pipeline_mode = #tpu.pipeline_mode<synchronous>, transform_indices = @transform_1, window_bounds = array<i64: 32, 128>}, {pipeline_mode = #tpu.pipeline_mode<synchronous>, transform_indices = @transform_2, window_bounds = array<i64: 1, 128>}, {pipeline_mode = #tpu.pipeline_mode<synchronous>, transform_indices = @transform_3, window_bounds = array<i64: 1, 128>}, {pipeline_mode = #tpu.pipeline_mode<synchronous>, transform_indices = @transform_4, window_bounds = array<i64: 1, 128>}, {pipeline_mode = #tpu.pipeline_mode<synchronous>, transform_indices = @transform_5, window_bounds = array<i64: 128, 128>}, {pipeline_mode = #tpu.pipeline_mode<synchronous>, transform_indices = @transform_6, window_bounds = array<i64: 1, 128>}, {pipeline_mode = #tpu.pipeline_mode<synchronous>, transform_indices = @transform_7, window_bounds = array<i64: 1, 128>}, {pipeline_mode = #tpu.pipeline_mode<synchronous>, transform_indices = @transform_8, window_bounds = array<i64: 1, 128>}, {pipeline_mode = #tpu.pipeline_mode<synchronous>, transform_indices = @transform_9, window_bounds = array<i64: 128, 8>}, {pipeline_mode = #tpu.pipeline_mode<synchronous>, transform_indices = @transform_10, window_bounds = array<i64: 1, 8>}, {transform_indices = @transform_11, window_bounds = array<i64: 8, 8>}]} {
    %c0 = arith.constant 0 : index
    %c0_0 = arith.constant 0 : index
    %0 = vector.load %arg1[%c0, %c0_0] : memref<8x32xbf16, #tpu.memory_space<vmem>>, vector<8x32xbf16>
    %c0_1 = arith.constant 0 : index
    %c0_2 = arith.constant 0 : index
    %1 = vector.load %arg2[%c0_1, %c0_2] : memref<32x128xbf16, #tpu.memory_space<vmem>>, vector<32x128xbf16>
    %cst = arith.constant dense<0.000000e+00> : vector<8x128xf32>
    %2 = tpu.matmul %0, %1, %cst {dimension_numbers = #tpu.dot_dimension_numbers<[1], [0], [0], [1], [0, 0, 1, 1], [], []>} : vector<8x32xbf16>, vector<32x128xbf16>, vector<8x128xf32> -> vector<8x128xf32>
    %c0_3 = arith.constant 0 : index
    %c0_4 = arith.constant 0 : index
    %3 = vector.load %arg3[%c0_3, %c0_4] : memref<1x128xf32, #tpu.memory_space<vmem>>, vector<1x128xf32>
    %4 = vector.broadcast %3 : vector<1x128xf32> to vector<8x128xf32>
    %5 = arith.addf %2, %4 : vector<8x128xf32>
    %cst_5 = arith.constant dense<0.000000e+00> : vector<8xf32>
    %6 = vector.multi_reduction <add>, %5, %cst_5 [1] : vector<8x128xf32> to vector<8xf32>
    %7 = vector.shape_cast %6 : vector<8xf32> to vector<8x1xf32>
    %cst_6 = arith.constant 1.562500e-02 : f32
    %8 = vector.broadcast %cst_6 : f32 to vector<8x1xf32>
    %9 = arith.mulf %7, %8 : vector<8x1xf32>
    %10 = vector.broadcast %9 : vector<8x1xf32> to vector<8x128xf32>
    %11 = arith.subf %5, %10 : vector<8x128xf32>
    %12 = tpu.iota {dimensions = array<i32: 1>} : vector<1x128xi32>
    %c64_i32 = arith.constant 64 : i32
    %13 = vector.broadcast %c64_i32 : i32 to vector<1x128xi32>
    %14 = arith.cmpi slt, %12, %13 : vector<1x128xi32>
    %cst_7 = arith.constant 0.000000e+00 : f32
    %15 = vector.shape_cast %14 : vector<1x128xi1> to vector<1x128xi1>
    %16 = vector.broadcast %15 : vector<1x128xi1> to vector<8x128xi1>
    %17 = vector.broadcast %cst_7 : f32 to vector<8x128xf32>
    %18 = arith.select %16, %11, %17 : vector<8x128xi1>, vector<8x128xf32>
    %19 = arith.mulf %18, %18 : vector<8x128xf32>
    %cst_8 = arith.constant dense<0.000000e+00> : vector<8xf32>
    %20 = vector.multi_reduction <add>, %19, %cst_8 [1] : vector<8x128xf32> to vector<8xf32>
    %21 = vector.shape_cast %20 : vector<8xf32> to vector<8x1xf32>
    %cst_9 = arith.constant 1.562500e-02 : f32
    %22 = vector.broadcast %cst_9 : f32 to vector<8x1xf32>
    %23 = arith.mulf %21, %22 : vector<8x1xf32>
    %cst_10 = arith.constant 9.99999974E-6 : f32
    %24 = vector.broadcast %cst_10 : f32 to vector<8x1xf32>
    %25 = arith.addf %23, %24 : vector<8x1xf32>
    %26 = math.rsqrt %25 : vector<8x1xf32>
    %27 = vector.broadcast %26 : vector<8x1xf32> to vector<8x128xf32>
    %28 = arith.mulf %18, %27 : vector<8x128xf32>
    %c0_11 = arith.constant 0 : index
    %c0_12 = arith.constant 0 : index
    %29 = vector.load %arg4[%c0_11, %c0_12] : memref<1x128xf32, #tpu.memory_space<vmem>>, vector<1x128xf32>
    %30 = vector.broadcast %29 : vector<1x128xf32> to vector<8x128xf32>
    %31 = arith.mulf %28, %30 : vector<8x128xf32>
    %c0_13 = arith.constant 0 : index
    %c0_14 = arith.constant 0 : index
    %32 = vector.load %arg5[%c0_13, %c0_14] : memref<1x128xf32, #tpu.memory_space<vmem>>, vector<1x128xf32>
    %33 = vector.broadcast %32 : vector<1x128xf32> to vector<8x128xf32>
    %34 = arith.addf %31, %33 : vector<8x128xf32>
    %cst_15 = arith.constant 0.000000e+00 : f32
    %35 = vector.broadcast %cst_15 : f32 to vector<8x128xf32>
    %36 = arith.maximumf %34, %35 : vector<8x128xf32>
    %37 = arith.truncf %36 : vector<8x128xf32> to vector<8x128xbf16>
    %c0_16 = arith.constant 0 : index
    %c0_17 = arith.constant 0 : index
    %38 = vector.load %arg6[%c0_16, %c0_17] : memref<128x128xbf16, #tpu.memory_space<vmem>>, vector<128x128xbf16>
    %cst_18 = arith.constant dense<0.000000e+00> : vector<8x128xf32>
    %39 = tpu.matmul %37, %38, %cst_18 {dimension_numbers = #tpu.dot_dimension_numbers<[1], [0], [0], [1], [0, 0, 1, 1], [], []>} : vector<8x128xbf16>, vector<128x128xbf16>, vector<8x128xf32> -> vector<8x128xf32>
    %c0_19 = arith.constant 0 : index
    %c0_20 = arith.constant 0 : index
    %40 = vector.load %arg7[%c0_19, %c0_20] : memref<1x128xf32, #tpu.memory_space<vmem>>, vector<1x128xf32>
    %41 = vector.broadcast %40 : vector<1x128xf32> to vector<8x128xf32>
    %42 = arith.addf %39, %41 : vector<8x128xf32>
    %cst_21 = arith.constant dense<0.000000e+00> : vector<8xf32>
    %43 = vector.multi_reduction <add>, %42, %cst_21 [1] : vector<8x128xf32> to vector<8xf32>
    %44 = vector.shape_cast %43 : vector<8xf32> to vector<8x1xf32>
    %cst_22 = arith.constant 1.562500e-02 : f32
    %45 = vector.broadcast %cst_22 : f32 to vector<8x1xf32>
    %46 = arith.mulf %44, %45 : vector<8x1xf32>
    %47 = vector.broadcast %46 : vector<8x1xf32> to vector<8x128xf32>
    %48 = arith.subf %42, %47 : vector<8x128xf32>
    %49 = tpu.iota {dimensions = array<i32: 1>} : vector<1x128xi32>
    %c64_i32_23 = arith.constant 64 : i32
    %50 = vector.broadcast %c64_i32_23 : i32 to vector<1x128xi32>
    %51 = arith.cmpi slt, %49, %50 : vector<1x128xi32>
    %cst_24 = arith.constant 0.000000e+00 : f32
    %52 = vector.shape_cast %51 : vector<1x128xi1> to vector<1x128xi1>
    %53 = vector.broadcast %52 : vector<1x128xi1> to vector<8x128xi1>
    %54 = vector.broadcast %cst_24 : f32 to vector<8x128xf32>
    %55 = arith.select %53, %48, %54 : vector<8x128xi1>, vector<8x128xf32>
    %56 = arith.mulf %55, %55 : vector<8x128xf32>
    %cst_25 = arith.constant dense<0.000000e+00> : vector<8xf32>
    %57 = vector.multi_reduction <add>, %56, %cst_25 [1] : vector<8x128xf32> to vector<8xf32>
    %58 = vector.shape_cast %57 : vector<8xf32> to vector<8x1xf32>
    %cst_26 = arith.constant 1.562500e-02 : f32
    %59 = vector.broadcast %cst_26 : f32 to vector<8x1xf32>
    %60 = arith.mulf %58, %59 : vector<8x1xf32>
    %cst_27 = arith.constant 9.99999974E-6 : f32
    %61 = vector.broadcast %cst_27 : f32 to vector<8x1xf32>
    %62 = arith.addf %60, %61 : vector<8x1xf32>
    %63 = math.rsqrt %62 : vector<8x1xf32>
    %64 = vector.broadcast %63 : vector<8x1xf32> to vector<8x128xf32>
    %65 = arith.mulf %55, %64 : vector<8x128xf32>
    %c0_28 = arith.constant 0 : index
    %c0_29 = arith.constant 0 : index
    %66 = vector.load %arg8[%c0_28, %c0_29] : memref<1x128xf32, #tpu.memory_space<vmem>>, vector<1x128xf32>
    %67 = vector.broadcast %66 : vector<1x128xf32> to vector<8x128xf32>
    %68 = arith.mulf %65, %67 : vector<8x128xf32>
    %c0_30 = arith.constant 0 : index
    %c0_31 = arith.constant 0 : index
    %69 = vector.load %arg9[%c0_30, %c0_31] : memref<1x128xf32, #tpu.memory_space<vmem>>, vector<1x128xf32>
    %70 = vector.broadcast %69 : vector<1x128xf32> to vector<8x128xf32>
    %71 = arith.addf %68, %70 : vector<8x128xf32>
    %cst_32 = arith.constant 0.000000e+00 : f32
    %72 = vector.broadcast %cst_32 : f32 to vector<8x128xf32>
    %73 = arith.maximumf %71, %72 : vector<8x128xf32>
    %74 = arith.truncf %73 : vector<8x128xf32> to vector<8x128xbf16>
    %c0_33 = arith.constant 0 : index
    %c0_34 = arith.constant 0 : index
    %75 = vector.load %arg10[%c0_33, %c0_34] : memref<128x8xbf16, #tpu.memory_space<vmem>>, vector<128x8xbf16>
    %cst_35 = arith.constant dense<0.000000e+00> : vector<8x8xf32>
    %76 = tpu.matmul %74, %75, %cst_35 {dimension_numbers = #tpu.dot_dimension_numbers<[1], [0], [0], [1], [0, 0, 1, 1], [], []>} : vector<8x128xbf16>, vector<128x8xbf16>, vector<8x8xf32> -> vector<8x8xf32>
    %c0_36 = arith.constant 0 : index
    %c0_37 = arith.constant 0 : index
    %77 = vector.load %arg11[%c0_36, %c0_37] : memref<1x8xf32, #tpu.memory_space<vmem>>, vector<1x8xf32>
    %78 = vector.broadcast %77 : vector<1x8xf32> to vector<8x8xf32>
    %79 = arith.addf %76, %78 : vector<8x8xf32>
    %c0_38 = arith.constant 0 : index
    %c0_39 = arith.constant 0 : index
    %80 = vector.load %arg12[%c0_38, %c0_39] : memref<8x8xf32, #tpu.memory_space<vmem>>, vector<8x8xf32>
    tpu.vector_store %arg12[%c0_38, %c0_39], %79 {strides = array<i32>} : memref<8x8xf32, #tpu.memory_space<vmem>>, vector<8x8xf32>,
    return
  }
  func.func @transform_0(%arg0: i32) -> (i32, i32) {
    %c0_i32 = arith.constant 0 : i32
    %c0_i32_0 = arith.constant 0 : i32
    return %arg0, %c0_i32 : i32, i32
  }
  func.func @transform_1(%arg0: i32) -> (i32, i32) {
    %c0_i32 = arith.constant 0 : i32
    %c0_i32_0 = arith.constant 0 : i32
    %c0_i32_1 = arith.constant 0 : i32
    return %c0_i32, %c0_i32_0 : i32, i32
  }
  func.func @transform_2(%arg0: i32) -> (i32, i32) {
    %c0_i32 = arith.constant 0 : i32
    %c0_i32_0 = arith.constant 0 : i32
    %c0_i32_1 = arith.constant 0 : i32
    return %c0_i32, %c0_i32_0 : i32, i32
  }
  func.func @transform_3(%arg0: i32) -> (i32, i32) {
    %c0_i32 = arith.constant 0 : i32
    %c0_i32_0 = arith.constant 0 : i32
    %c0_i32_1 = arith.constant 0 : i32
    return %c0_i32, %c0_i32_0 : i32, i32
  }
  func.func @transform_4(%arg0: i32) -> (i32, i32) {
    %c0_i32 = arith.constant 0 : i32
    %c0_i32_0 = arith.constant 0 : i32
    %c0_i32_1 = arith.constant 0 : i32
    return %c0_i32, %c0_i32_0 : i32, i32
  }
  func.func @transform_5(%arg0: i32) -> (i32, i32) {
    %c0_i32 = arith.constant 0 : i32
    %c0_i32_0 = arith.constant 0 : i32
    %c0_i32_1 = arith.constant 0 : i32
    return %c0_i32, %c0_i32_0 : i32, i32
  }
  func.func @transform_6(%arg0: i32) -> (i32, i32) {
    %c0_i32 = arith.constant 0 : i32
    %c0_i32_0 = arith.constant 0 : i32
    %c0_i32_1 = arith.constant 0 : i32
    return %c0_i32, %c0_i32_0 : i32, i32
  }
  func.func @transform_7(%arg0: i32) -> (i32, i32) {
    %c0_i32 = arith.constant 0 : i32
    %c0_i32_0 = arith.constant 0 : i32
    %c0_i32_1 = arith.constant 0 : i32
    return %c0_i32, %c0_i32_0 : i32, i32
  }
  func.func @transform_8(%arg0: i32) -> (i32, i32) {
    %c0_i32 = arith.constant 0 : i32
    %c0_i32_0 = arith.constant 0 : i32
    %c0_i32_1 = arith.constant 0 : i32
    return %c0_i32, %c0_i32_0 : i32, i32
  }
  func.func @transform_9(%arg0: i32) -> (i32, i32) {
    %c0_i32 = arith.constant 0 : i32
    %c0_i32_0 = arith.constant 0 : i32
    %c0_i32_1 = arith.constant 0 : i32
    return %c0_i32, %c0_i32_0 : i32, i32
  }
  func.func @transform_10(%arg0: i32) -> (i32, i32) {
    %c0_i32 = arith.constant 0 : i32
    %c0_i32_0 = arith.constant 0 : i32
    %c0_i32_1 = arith.constant 0 : i32
    return %c0_i32, %c0_i32_0 : i32, i32
  }
  func.func @transform_11(%arg0: i32) -> (i32, i32) {
    %c0_i32 = arith.constant 0 : i32
    %c0_i32_0 = arith.constant 0 : i32
    return %arg0, %c0_i32 : i32, i32
  }
}

module attributes {stable_mosaic.version = 11 : i64} {
  func.func @kernel(%arg0: i32, %arg1: memref<8x32xbf16, #tpu.memory_space<vmem>>, %arg2: memref<32x128xbf16, #tpu.memory_space<vmem>>, %arg3: memref<1x128xf32, #tpu.memory_space<vmem>>, %arg4: memref<1x128xf32, #tpu.memory_space<vmem>>, %arg5: memref<1x128xf32, #tpu.memory_space<vmem>>, %arg6: memref<128x128xbf16, #tpu.memory_space<vmem>>, %arg7: memref<1x128xf32, #tpu.memory_space<vmem>>, %arg8: memref<1x128xf32, #tpu.memory_space<vmem>>, %arg9: memref<1x128xf32, #tpu.memory_space<vmem>>, %arg10: memref<128x8xbf16, #tpu.memory_space<vmem>>, %arg11: memref<1x8xf32, #tpu.memory_space<vmem>>, %arg12: memref<8x8xf32, #tpu.memory_space<vmem>>) attributes {dimension_semantics = [#tpu.dimension_semantics<parallel>], iteration_bounds = array<i64: 1>, scalar_prefetch = 0 : i64, scratch_operands = 0 : i64, tpu.core_type = #tpu.core_type<tc>, window_params = [{transform_indices = @transform_0, window_bounds = array<i64: 8, 32>}, {pipeline_mode = #tpu.pipeline_mode<synchronous>, transform_indices = @transform_1, window_bounds = array<i64: 32, 128>}, {pipeline_mode = #tpu.pipeline_mode<synchronous>, transform_indices = @transform_2, window_bounds = array<i64: 1, 128>}, {pipeline_mode = #tpu.pipeline_mode<synchronous>, transform_indices = @transform_3, window_bounds = array<i64: 1, 128>}, {pipeline_mode = #tpu.pipeline_mode<synchronous>, transform_indices = @transform_4, window_bounds = array<i64: 1, 128>}, {pipeline_mode = #tpu.pipeline_mode<synchronous>, transform_indices = @transform_5, window_bounds = array<i64: 128, 128>}, {pipeline_mode = #tpu.pipeline_mode<synchronous>, transform_indices = @transform_6, window_bounds = array<i64: 1, 128>}, {pipeline_mode = #tpu.pipeline_mode<synchronous>, transform_indices = @transform_7, window_bounds = array<i64: 1, 128>}, {pipeline_mode = #tpu.pipeline_mode<synchronous>, transform_indices = @transform_8, window_bounds = array<i64: 1, 128>}, {pipeline_mode = #tpu.pipeline_mode<synchronous>, transform_indices = @transform_9, window_bounds = array<i64: 128, 8>}, {pipeline_mode = #tpu.pipeline_mode<synchronous>, transform_indices = @transform_10, window_bounds = array<i64: 1, 8>}, {transform_indices = @transform_11, window_bounds = array<i64: 8, 8>}]} {
    %c0 = arith.constant 0 : index
    %c0_0 = arith.constant 0 : index
    %0 = vector.load %arg1[%c0, %c0_0] : memref<8x32xbf16, #tpu.memory_space<vmem>>, vector<8x32xbf16>
    %c0_1 = arith.constant 0 : index
    %c0_2 = arith.constant 0 : index
    %1 = vector.load %arg2[%c0_1, %c0_2] : memref<32x128xbf16, #tpu.memory_space<vmem>>, vector<32x128xbf16>
    %cst = arith.constant dense<0.000000e+00> : vector<8x128xf32>
    %2 = tpu.matmul %0, %1, %cst {dimension_numbers = #tpu.dot_dimension_numbers<[1], [0], [0], [1], [0, 0, 1, 1], [], []>} : vector<8x32xbf16>, vector<32x128xbf16>, vector<8x128xf32> -> vector<8x128xf32>
    %c0_3 = arith.constant 0 : index
    %c0_4 = arith.constant 0 : index
    %3 = vector.load %arg3[%c0_3, %c0_4] : memref<1x128xf32, #tpu.memory_space<vmem>>, vector<1x128xf32>
    %4 = vector.broadcast %3 : vector<1x128xf32> to vector<8x128xf32>
    %5 = arith.addf %2, %4 : vector<8x128xf32>
    %cst_5 = arith.constant dense<0.000000e+00> : vector<8xf32>
    %6 = vector.multi_reduction <add>, %5, %cst_5 [1] : vector<8x128xf32> to vector<8xf32>
    %7 = vector.shape_cast %6 : vector<8xf32> to vector<8x1xf32>
    %cst_6 = arith.constant 1.562500e-02 : f32
    %8 = vector.broadcast %cst_6 : f32 to vector<8x1xf32>
    %9 = arith.mulf %7, %8 : vector<8x1xf32>
    %10 = vector.broadcast %9 : vector<8x1xf32> to vector<8x128xf32>
    %11 = arith.subf %5, %10 : vector<8x128xf32>
    %12 = tpu.iota {dimensions = array<i32: 1>} : vector<1x128xi32>
    %c64_i32 = arith.constant 64 : i32
    %13 = vector.broadcast %c64_i32 : i32 to vector<1x128xi32>
    %14 = arith.cmpi slt, %12, %13 : vector<1x128xi32>
    %cst_7 = arith.constant 0.000000e+00 : f32
    %15 = vector.shape_cast %14 : vector<1x128xi1> to vector<1x128xi1>
    %16 = vector.broadcast %15 : vector<1x128xi1> to vector<8x128xi1>
    %17 = vector.broadcast %cst_7 : f32 to vector<8x128xf32>
    %18 = arith.select %16, %11, %17 : vector<8x128xi1>, vector<8x128xf32>
    %19 = arith.mulf %18, %18 : vector<8x128xf32>
    %cst_8 = arith.constant dense<0.000000e+00> : vector<8xf32>
    %20 = vector.multi_reduction <add>, %19, %cst_8 [1] : vector<8x128xf32> to vector<8xf32>
    %21 = vector.shape_cast %20 : vector<8xf32> to vector<8x1xf32>
    %cst_9 = arith.constant 1.562500e-02 : f32
    %22 = vector.broadcast %cst_9 : f32 to vector<8x1xf32>
    %23 = arith.mulf %21, %22 : vector<8x1xf32>
    %cst_10 = arith.constant 9.99999974E-6 : f32
    %24 = vector.broadcast %cst_10 : f32 to vector<8x1xf32>
    %25 = arith.addf %23, %24 : vector<8x1xf32>
    %26 = math.rsqrt %25 : vector<8x1xf32>
    %27 = vector.broadcast %26 : vector<8x1xf32> to vector<8x128xf32>
    %28 = arith.mulf %18, %27 : vector<8x128xf32>
    %c0_11 = arith.constant 0 : index
    %c0_12 = arith.constant 0 : index
    %29 = vector.load %arg4[%c0_11, %c0_12] : memref<1x128xf32, #tpu.memory_space<vmem>>, vector<1x128xf32>
    %30 = vector.broadcast %29 : vector<1x128xf32> to vector<8x128xf32>
    %31 = arith.mulf %28, %30 : vector<8x128xf32>
    %c0_13 = arith.constant 0 : index
    %c0_14 = arith.constant 0 : index
    %32 = vector.load %arg5[%c0_13, %c0_14] : memref<1x128xf32, #tpu.memory_space<vmem>>, vector<1x128xf32>
    %33 = vector.broadcast %32 : vector<1x128xf32> to vector<8x128xf32>
    %34 = arith.addf %31, %33 : vector<8x128xf32>
    %cst_15 = arith.constant 0.000000e+00 : f32
    %35 = vector.broadcast %cst_15 : f32 to vector<8x128xf32>
    %36 = arith.maximumf %34, %35 : vector<8x128xf32>
    %37 = arith.truncf %36 : vector<8x128xf32> to vector<8x128xbf16>
    %c0_16 = arith.constant 0 : index
    %c0_17 = arith.constant 0 : index
    %38 = vector.load %arg6[%c0_16, %c0_17] : memref<128x128xbf16, #tpu.memory_space<vmem>>, vector<128x128xbf16>
    %cst_18 = arith.constant dense<0.000000e+00> : vector<8x128xf32>
    %39 = tpu.matmul %37, %38, %cst_18 {dimension_numbers = #tpu.dot_dimension_numbers<[1], [0], [0], [1], [0, 0, 1, 1], [], []>} : vector<8x128xbf16>, vector<128x128xbf16>, vector<8x128xf32> -> vector<8x128xf32>
    %c0_19 = arith.constant 0 : index
    %c0_20 = arith.constant 0 : index
    %40 = vector.load %arg7[%c0_19, %c0_20] : memref<1x128xf32, #tpu.memory_space<vmem>>, vector<1x128xf32>
    %41 = vector.broadcast %40 : vector<1x128xf32> to vector<8x128xf32>
    %42 = arith.addf %39, %41 : vector<8x128xf32>
    %cst_21 = arith.constant dense<0.000000e+00> : vector<8xf32>
    %43 = vector.multi_reduction <add>, %42, %cst_21 [1] : vector<8x128xf32> to vector<8xf32>
    %44 = vector.shape_cast %43 : vector<8xf32> to vector<8x1xf32>
    %cst_22 = arith.constant 1.562500e-02 : f32
    %45 = vector.broadcast %cst_22 : f32 to vector<8x1xf32>
    %46 = arith.mulf %44, %45 : vector<8x1xf32>
    %47 = vector.broadcast %46 : vector<8x1xf32> to vector<8x128xf32>
    %48 = arith.subf %42, %47 : vector<8x128xf32>
    %49 = tpu.iota {dimensions = array<i32: 1>} : vector<1x128xi32>
    %c64_i32_23 = arith.constant 64 : i32
    %50 = vector.broadcast %c64_i32_23 : i32 to vector<1x128xi32>
    %51 = arith.cmpi slt, %49, %50 : vector<1x128xi32>
    %cst_24 = arith.constant 0.000000e+00 : f32
    %52 = vector.shape_cast %51 : vector<1x128xi1> to vector<1x128xi1>
    %53 = vector.broadcast %52 : vector<1x128xi1> to vector<8x128xi1>
    %54 = vector.broadcast %cst_24 : f32 to vector<8x128xf32>
    %55 = arith.select %53, %48, %54 : vector<8x128xi1>, vector<8x128xf32>
    %56 = arith.mulf %55, %55 : vector<8x128xf32>
    %cst_25 = arith.constant dense<0.000000e+00> : vector<8xf32>
    %57 = vector.multi_reduction <add>, %56, %cst_25 [1] : vector<8x128xf32> to vector<8xf32>
    %58 = vector.shape_cast %57 : vector<8xf32> to vector<8x1xf32>
    %cst_26 = arith.constant 1.562500e-02 : f32
    %59 = vector.broadcast %cst_26 : f32 to vector<8x1xf32>
    %60 = arith.mulf %58, %59 : vector<8x1xf32>
    %cst_27 = arith.constant 9.99999974E-6 : f32
    %61 = vector.broadcast %cst_27 : f32 to vector<8x1xf32>
    %62 = arith.addf %60, %61 : vector<8x1xf32>
    %63 = math.rsqrt %62 : vector<8x1xf32>
    %64 = vector.broadcast %63 : vector<8x1xf32> to vector<8x128xf32>
    %65 = arith.mulf %55, %64 : vector<8x128xf32>
    %c0_28 = arith.constant 0 : index
    %c0_29 = arith.constant 0 : index
    %66 = vector.load %arg8[%c0_28, %c0_29] : memref<1x128xf32, #tpu.memory_space<vmem>>, vector<1x128xf32>
    %67 = vector.broadcast %66 : vector<1x128xf32> to vector<8x128xf32>
    %68 = arith.mulf %65, %67 : vector<8x128xf32>
    %c0_30 = arith.constant 0 : index
    %c0_31 = arith.constant 0 : index
    %69 = vector.load %arg9[%c0_30, %c0_31] : memref<1x128xf32, #tpu.memory_space<vmem>>, vector<1x128xf32>
    %70 = vector.broadcast %69 : vector<1x128xf32> to vector<8x128xf32>
    %71 = arith.addf %68, %70 : vector<8x128xf32>
    %cst_32 = arith.constant 0.000000e+00 : f32
    %72 = vector.broadcast %cst_32 : f32 to vector<8x128xf32>
    %73 = arith.maximumf %71, %72 : vector<8x128xf32>
    %74 = arith.truncf %73 : vector<8x128xf32> to vector<8x128xbf16>
    %c0_33 = arith.constant 0 : index
    %c0_34 = arith.constant 0 : index
    %75 = vector.load %arg10[%c0_33, %c0_34] : memref<128x8xbf16, #tpu.memory_space<vmem>>, vector<128x8xbf16>
    %cst_35 = arith.constant dense<0.000000e+00> : vector<8x8xf32>
    %76 = tpu.matmul %74, %75, %cst_35 {dimension_numbers = #tpu.dot_dimension_numbers<[1], [0], [0], [1], [0, 0, 1, 1], [], []>} : vector<8x128xbf16>, vector<128x8xbf16>, vector<8x8xf32> -> vector<8x8xf32>
    %c0_36 = arith.constant 0 : index
    %c0_37 = arith.constant 0 : index
    %77 = vector.load %arg11[%c0_36, %c0_37] : memref<1x8xf32, #tpu.memory_space<vmem>>, vector<1x8xf32>
    %78 = vector.broadcast %77 : vector<1x8xf32> to vector<8x8xf32>
    %79 = arith.addf %76, %78 : vector<8x8xf32>
    %c0_38 = arith.constant 0 : index
    %c0_39 = arith.constant 0 : index
    %80 = vector.load %arg12[%c0_38, %c0_39] : memref<8x8xf32, #tpu.memory_space<vmem>>, vector<8x8xf32>
    tpu.vector_store %arg12[%c0_38, %c0_39], %79 {strides = array<i32>} : memref<8x8xf32, #tpu.memory_space<vmem>>, vector<8x8xf32>,
    return
  }
  func.func @transform_0(%arg0: i32) -> (i32, i32) {
    %c0_i32 = arith.constant 0 : i32
    %c0_i32_0 = arith.constant 0 : i32
    return %arg0, %c0_i32 : i32, i32
  }
  func.func @transform_1(%arg0: i32) -> (i32, i32) {
    %c0_i32 = arith.constant 0 : i32
    %c0_i32_0 = arith.constant 0 : i32
    %c0_i32_1 = arith.constant 0 : i32
    return %c0_i32, %c0_i32_0 : i32, i32
  }
  func.func @transform_2(%arg0: i32) -> (i32, i32) {
    %c0_i32 = arith.constant 0 : i32
    %c0_i32_0 = arith.constant 0 : i32
    %c0_i32_1 = arith.constant 0 : i32
    return %c0_i32, %c0_i32_0 : i32, i32
  }
  func.func @transform_3(%arg0: i32) -> (i32, i32) {
    %c0_i32 = arith.constant 0 : i32
    %c0_i32_0 = arith.constant 0 : i32
    %c0_i32_1 = arith.constant 0 : i32
    return %c0_i32, %c0_i32_0 : i32, i32
  }
  func.func @transform_4(%arg0: i32) -> (i32, i32) {
    %c0_i32 = arith.constant 0 : i32
    %c0_i32_0 = arith.constant 0 : i32
    %c0_i32_1 = arith.constant 0 : i32
    return %c0_i32, %c0_i32_0 : i32, i32
  }
  func.func @transform_5(%arg0: i32) -> (i32, i32) {
    %c0_i32 = arith.constant 0 : i32
    %c0_i32_0 = arith.constant 0 : i32
    %c0_i32_1 = arith.constant 0 : i32
    return %c0_i32, %c0_i32_0 : i32, i32
  }
  func.func @transform_6(%arg0: i32) -> (i32, i32) {
    %c0_i32 = arith.constant 0 : i32
    %c0_i32_0 = arith.constant 0 : i32
    %c0_i32_1 = arith.constant 0 : i32
    return %c0_i32, %c0_i32_0 : i32, i32
  }
  func.func @transform_7(%arg0: i32) -> (i32, i32) {
    %c0_i32 = arith.constant 0 : i32
    %c0_i32_0 = arith.constant 0 : i32
    %c0_i32_1 = arith.constant 0 : i32
    return %c0_i32, %c0_i32_0 : i32, i32
  }
  func.func @transform_8(%arg0: i32) -> (i32, i32) {
    %c0_i32 = arith.constant 0 : i32
    %c0_i32_0 = arith.constant 0 : i32
    %c0_i32_1 = arith.constant 0 : i32
    return %c0_i32, %c0_i32_0 : i32, i32
  }
  func.func @transform_9(%arg0: i32) -> (i32, i32) {
    %c0_i32 = arith.constant 0 : i32
    %c0_i32_0 = arith.constant 0 : i32
    %c0_i32_1 = arith.constant 0 : i32
    return %c0_i32, %c0_i32_0 : i32, i32
  }
  func.func @transform_10(%arg0: i32) -> (i32, i32) {
    %c0_i32 = arith.constant 0 : i32
    %c0_i32_0 = arith.constant 0 : i32
    %c0_i32_1 = arith.constant 0 : i32
    return %c0_i32, %c0_i32_0 : i32, i32
  }
  func.func @transform_11(%arg0: i32) -> (i32, i32) {
    %c0_i32 = arith.constant 0 : i32
    %c0_i32_0 = arith.constant 0 : i32
    return %arg0, %c0_i32 : i32, i32
  }
}

</mosaic_0001>

<bundles_post_ra>
// kernel: evolvable_mlp_forward.1
= control target key start
LH: loop header
LB: loop body
LE: loop exit
PB: predicated region body
PF: predicated region fallthrough
CT: control target
= control target key end

     0   :  { %16 = vsyncpa [#allocation3], 0  ;;  %s648_s0 = inlined_call_operand.vmem [shape: bf16[8,32], index: 0, kind: input, shape index: {}]   ;;  %s649_s1 = inlined_call_operand.hbm [shape: bf16[32,128], index: 1, kind: input, shape index: {}]   ;;  %s650_s2 = inlined_call_operand.vmem [shape: f32[1,128], index: 2, kind: input, shape index: {}]   ;;  %s651_s3 = inlined_call_operand.vmem [shape: f32[1,128], index: 3, kind: input, shape index: {}]   ;;  %s652_s4 = inlined_call_operand.vmem [shape: f32[1,128], index: 4, kind: input, shape index: {}]   ;;  %s653_s5 = inlined_call_operand.vmem [shape: bf16[128,128], index: 5, kind: input, shape index: {}]   ;;  %s654_s6 = inlined_call_operand.vmem [shape: f32[1,128], index: 6, kind: input, shape index: {}]   ;;  %s655_s7 = inlined_call_operand.vmem [shape: f32[1,128], index: 7, kind: input, shape index: {}]   ;;  %s656_s8 = inlined_call_operand.vmem [shape: f32[1,128], index: 8, kind: input, shape index: {}]   ;;  %s657_s9 = inlined_call_operand.vmem [shape: bf16[128,8], index: 9, kind: input, shape index: {}]   ;;  %s658_s10 = inlined_call_operand.vmem [shape: f32[1,8], index: 10, kind: input, shape index: {}]   ;;  %s659_s11 = inlined_call_operand.hbm [shape: f32[8,8], index: 11, kind: output, shape index: {}]  }
   0x1   :  { %17 = vsyncpa [#allocation4], 0  ;;  %s24_s19 = sshll.u32 %s649_s1, 4  ;;  %s504_s20 = smov [#allocation2]   ;;  %s25_s19 = int_to_ptr.hbm [resolvable:$true] %s24_s19 }
   0x2   :  { %s26_s21 = sshll.u32 %s504_s20, 4  ;;  %s505_s22 = smov 64   ;;  %s27_s21 = int_to_ptr.vmem [resolvable:$true] %s26_s21 }
   0x3   :  { %s506_s23 = smov 4  }
   0x4   :  { %32 = dma.hbm_to_vmem [thread:$0]  %s25_s19, 256, %s27_s21, [#allocation3], %s505_s22, %s505_s22, %s506_s23  }
   0x5   :  { %500 = dma.done.wait [#allocation3], 256  }
   0x6   :  { %501 = vsyncadd [#allocation3], 4294967040  ;;  %v420_v0 = vld [vmem:[#allocation2 + $0x8] sm:$0xff]  ;;  %v419_v1 = vld [vmem:[#allocation2] sm:$0xff]  ;;  %vm77_vm0 = vcmask 261120   ;;  %v98_v7 = vlaneseq  ;;  %s507_s23 = smov [#allocation5]  }
   0x7   :  { %87 = vmatpush.bf16.msra.mxu0 %v420_v0  ;;  %v56_v2 = vld [vmem:[%s648_s0] sm:$0xf]  ;;  %v428_v14 = vld [vmem:[%s653_s5 + $0x38] sm:$0xff]  ;;  %v427_v15 = vld [vmem:[%s653_s5 + $0x30] sm:$0xff]  ;;  %vm327_vm8 = vcmask 64512  }
   0x8   :  { %v441_v3 = vld [vmem:[%s650_s2] ss:$0 sm:$0xff]  ;;  %v99_v8 = vand.u32 127, %v98_v7  ;;  %200 = vmatpush.bf16.msra.mxu1 %v428_v14  ;;  %v426_v16 = vld [vmem:[%s653_s5 + $0x28] sm:$0xff]  ;;  %v424_v18 = vld [vmem:[%s653_s5 + $0x18] sm:$0xff] }
   0x9   :  { %v425_v17 = vld [vmem:[%s653_s5 + $0x20] sm:$0xff]  ;;  %v423_v19 = vld [vmem:[%s653_s5 + $0x10] sm:$0xff]  ;;  %v422_v20 = vld [vmem:[%s653_s5 + $0x8] sm:$0xff] }
   0xa   :  { %vm100_vm1 = vcmp.lt.s32.totalorder %v99_v8, 64  ;;  %v421_v21 = vld [vmem:[%s653_s5] sm:$0xff]  ;;  %v436_v48 = vld [vmem:[%s657_s9 + $0x38] sm:$0xff]  ;;  %v435_v49 = vld [vmem:[%s657_s9 + $0x30] sm:$0xff]  ;;  %s334_s5 = sshll.u32 %s507_s23, 4  ;;  %s335_s5 = int_to_ptr.vmem [resolvable:$true] %s334_s5 }
   0xb   :  { %88 = vmatpush.bf16.msra.mxu0 %v419_v1  ;;  %v442_v31 = vld [vmem:[%s651_s3] ss:$0 sm:$0xff]  ;;  %314 = vmatpush.bf16.msra.mxu2 %v436_v48  ;;  %v434_v50 = vld [vmem:[%s657_s9 + $0x28] sm:$0xff]  ;;  %v432_v52 = vld [vmem:[%s657_s9 + $0x18] sm:$0xff] }
   0xc   :  { %201 = vmatpush.bf16.msra.mxu1 %v427_v15  ;;  %v443_v34 = vld [vmem:[%s652_s4] ss:$0 sm:$0xff]  ;;  %v431_v53 = vld [vmem:[%s657_s9 + $0x10] sm:$0xff]  ;;  %v430_v54 = vld [vmem:[%s657_s9 + $0x8] sm:$0xff] }
   0xd   :  { %v444_v39 = vld [vmem:[%s654_s6] ss:$0 sm:$0xff] }
   0xe   :  { %354 = vmatmul.msk.bf16.vlgmr.msra.gmra.mxu0 %vm77_vm0, %v56_v2  ;;  %v433_v51 = vld [vmem:[%s657_s9 + $0x20] sm:$0xff] }
   0xf   :  { %315 = vmatpush.bf16.msra.mxu2 %v435_v49  ;;  %v429_v55 = vld [vmem:[%s657_s9] sm:$0xff] }
  0x10   :  { %202 = vmatpush.bf16.msra.mxu1 %v426_v16  ;;  %v445_v1 = vld [vmem:[%s655_s7] ss:$0 sm:$0xff]  ;;  %s336_s7 = sshll.u32 %s659_s11, 4  ;;  %s337_s7 = int_to_ptr.hbm [resolvable:$true] %s336_s7 }
  0x13   :  { %316 = vmatpush.bf16.msra.mxu2 %v434_v50 }
  0x14   :  { %203 = vmatpush.bf16.msra.mxu1 %v425_v17 }
  0x17   :  { %317 = vmatpush.bf16.msra.mxu2 %v433_v51 }
  0x18   :  { %204 = vmatpush.bf16.msra.mxu1 %v424_v18 }
  0x1b   :  { %318 = vmatpush.bf16.msra.mxu2 %v432_v52 }
  0x1c   :  { %205 = vmatpush.bf16.msra.mxu1 %v423_v19 }
  0x1f   :  { %319 = vmatpush.bf16.msra.mxu2 %v431_v53 }
  0x20   :  { %206 = vmatpush.bf16.msra.mxu1 %v422_v20 }
  0x23   :  { %320 = vmatpush.bf16.msra.mxu2 %v430_v54 }
  0x24   :  { %207 = vmatpush.bf16.msra.mxu1 %v421_v21 }
  0x27   :  { %321 = vmatpush.bf16.msra.mxu2 %v429_v55 }
  0x8b   :  { %v90_v4 = vpop.f32.mrf.mxu0 }
  0x8c   :  { %v91_v5 = vadd.f32 %v441_v3, %v90_v4  ;;  %v446_v4 = vld [vmem:[%s656_s8] ss:$0 sm:$0xff] }
  0x8e   :  { %94 = vadd.xlane.f32.xlu0 %v91_v5 }
  0x93   :  { %v92_v6 = vpop.f32.mrf.mxu0 }
 0x101   :  { %v95_v9 = vpop.xlane.xlu0 %94 }
 0x102   :  { %v96_v10 = vmul.f32 0.015625, %v95_v9  ;;  %v447_v9 = vld [vmem:[%s658_s10] ss:$0 sm:$0xff] }
 0x104   :  { %v97_v11 = vsub.f32 %v91_v5, %v96_v10 }
 0x106   :  { %v103_v12 = vsel %vm100_vm1, %v97_v11, 0.0 }
 0x107   :  { %v104_v13 = vmul.f32 %v103_v12, %v103_v12 }
 0x109   :  { %105 = vadd.xlane.f32.xlu0 %v104_v13 }
 0x17c   :  { %v106_v22 = vpop.xlane.xlu0 %105 }
 0x17d   :  { %v107_v23 = vmul.f32 0.015625, %v106_v22 }
 0x17f   :  { %v108_v24 = vadd.f32 1e-05, %v107_v23 }
 0x181   :  { %448 = vrsqrt.f32 %v108_v24  ;;  %vm115_vm3 = vweird.f32 %v108_v24 }
 0x187   :  { %v449_v25 = vpop.eup %448 }
 0x188   :  { %v110_v26 = vmul.f32 %v449_v25, %v108_v24  ;;  %vm116_vm2 = vweird.f32 %v449_v25 }
 0x189   :  { %vm117_vm4 = vmor %vm115_vm3, %vm116_vm2 }
 0x18a   :  { %v111_v27 = vmul.f32 %v449_v25, %v110_v26 }
 0x18c   :  { %v112_v28 = vmul.f32 0.5, %v111_v27 }
 0x18e   :  { %v113_v29 = vsub.f32 1.5, %v112_v28 }
 0x190   :  { %v114_v30 = vmul.f32 %v449_v25, %v113_v29 }
 0x192   :  { %v118_v32 = vsel %vm117_vm4, %v449_v25, %v114_v30 }
 0x193   :  { %v119_v33 = vmul.f32 %v118_v32, %v103_v12 }
 0x195   :  { %v124_v35 = vmul.f32 %v442_v31, %v119_v33 }
 0x197   :  { %v129_v36 = vadd.f32 %v443_v34, %v124_v35 }
 0x199   :  { %v130_v37 = vmax.f32 %v129_v36, 0.0 }
 0x19b   :  { %v131_v38 = vpack.c.bf16 %v130_v37, %v130_v37 }
 0x19d   :  { %208 = vmatmul.bf16.vlgmr.msra.gmra.mxu1 %v131_v38 }
 0x21a   :  { %v209_v40 = vpop.f32.mrf.mxu1 }
 0x21b   :  { %v210_v41 = vadd.f32 %v444_v39, %v209_v40 }
 0x21d   :  { %213 = vadd.xlane.f32.xlu1 %v210_v41 }
 0x222   :  { %v211_v42 = vpop.f32.mrf.mxu1 }
 0x290   :  { %v214_v43 = vpop.xlane.xlu1 %213 }
 0x291   :  { %v215_v44 = vmul.f32 0.015625, %v214_v43 }
 0x293   :  { %v216_v45 = vsub.f32 %v210_v41, %v215_v44 }
 0x295   :  { %v217_v46 = vsel %vm100_vm1, %v216_v45, 0.0 }
 0x296   :  { %v218_v47 = vmul.f32 %v217_v46, %v217_v46 }
 0x298   :  { %219 = vadd.xlane.f32.xlu1 %v218_v47 }
 0x30b   :  { %v220_v56 = vpop.xlane.xlu1 %219 }
 0x30c   :  { %v221_v57 = vmul.f32 0.015625, %v220_v56 }
 0x30e   :  { %v222_v58 = vadd.f32 1e-05, %v221_v57 }
 0x310   :  { %450 = vrsqrt.f32 %v222_v58  ;;  %vm229_vm6 = vweird.f32 %v222_v58 }
 0x316   :  { %v451_v59 = vpop.eup %450 }
 0x317   :  { %v224_v60 = vmul.f32 %v451_v59, %v222_v58  ;;  %vm230_vm5 = vweird.f32 %v451_v59 }
 0x318   :  { %vm231_vm7 = vmor %vm229_vm6, %vm230_vm5 }
 0x319   :  { %v225_v61 = vmul.f32 %v451_v59, %v224_v60 }
 0x31b   :  { %v226_v62 = vmul.f32 0.5, %v225_v61 }
 0x31d   :  { %v227_v63 = vsub.f32 1.5, %v226_v62 }
 0x31f   :  { %v228_v0 = vmul.f32 %v451_v59, %v227_v63 }
 0x321   :  { %v232_v2 = vsel %vm231_vm7, %v451_v59, %v228_v0 }
 0x322   :  { %v233_v3 = vmul.f32 %v232_v2, %v217_v46 }
 0x324   :  { %v238_v5 = vmul.f32 %v445_v1, %v233_v3 }
 0x326   :  { %v243_v6 = vadd.f32 %v446_v4, %v238_v5 }
 0x328   :  { %v244_v7 = vmax.f32 %v243_v6, 0.0 }
 0x32a   :  { %v245_v8 = vpack.c.bf16 %v244_v7, %v244_v7 }
 0x32c   :  { %322 = vmatmul.bf16.vlgmr.msra.gmra.mxu2 %v245_v8 }
 0x3af   :  { %v323_v10 = vpop.f32.mrf.mxu2 }
 0x3b0   :  { %v324_v11 = vadd.f32 %v447_v9, %v323_v10 }
 0x3b2   :  { %328 = vst.msk [vmem:[#allocation5] sm:$0xff] %vm327_vm8, %v324_v11 }
 0x3b3   :  { %339 = dma.vmem_to_hbm [thread:$0]  %s335_s5, 128, %s337_s7, [#allocation4]  }
 0x3b7   :  { %v325_v12 = vpop.f32.mrf.mxu2 }
 0x3b8   :  { %502 = dma.done.wait [#allocation4], 128  }
 0x3b9   :  { %503 = vsyncadd [#allocation4], 4294967168 }
 0x3ba   :  { %344 = vsyncpa [#allocation3], 1 }
 0x3bb   :  { %345 = vsyncpa [#allocation4], 1 }

// kernel: evolvable_mlp_forward.1
= control target key start
LH: loop header
LB: loop body
LE: loop exit
PB: predicated region body
PF: predicated region fallthrough
CT: control target
= control target key end

     0   :  { %16 = vsyncpa [#allocation3], 0  ;;  %s648_s0 = inlined_call_operand.vmem [shape: bf16[8,32], index: 0, kind: input, shape index: {}]   ;;  %s649_s1 = inlined_call_operand.hbm [shape: bf16[32,128], index: 1, kind: input, shape index: {}]   ;;  %s650_s2 = inlined_call_operand.vmem [shape: f32[1,128], index: 2, kind: input, shape index: {}]   ;;  %s651_s3 = inlined_call_operand.vmem [shape: f32[1,128], index: 3, kind: input, shape index: {}]   ;;  %s652_s4 = inlined_call_operand.vmem [shape: f32[1,128], index: 4, kind: input, shape index: {}]   ;;  %s653_s5 = inlined_call_operand.vmem [shape: bf16[128,128], index: 5, kind: input, shape index: {}]   ;;  %s654_s6 = inlined_call_operand.vmem [shape: f32[1,128], index: 6, kind: input, shape index: {}]   ;;  %s655_s7 = inlined_call_operand.vmem [shape: f32[1,128], index: 7, kind: input, shape index: {}]   ;;  %s656_s8 = inlined_call_operand.vmem [shape: f32[1,128], index: 8, kind: input, shape index: {}]   ;;  %s657_s9 = inlined_call_operand.vmem [shape: bf16[128,8], index: 9, kind: input, shape index: {}]   ;;  %s658_s10 = inlined_call_operand.vmem [shape: f32[1,8], index: 10, kind: input, shape index: {}]   ;;  %s659_s11 = inlined_call_operand.hbm [shape: f32[8,8], index: 11, kind: output, shape index: {}]  }
   0x1   :  { %17 = vsyncpa [#allocation4], 0  ;;  %s24_s19 = sshll.u32 %s649_s1, 4  ;;  %s504_s20 = smov [#allocation2]   ;;  %s25_s19 = int_to_ptr.hbm [resolvable:$true] %s24_s19 }
   0x2   :  { %s26_s21 = sshll.u32 %s504_s20, 4  ;;  %s505_s22 = smov 64   ;;  %s27_s21 = int_to_ptr.vmem [resolvable:$true] %s26_s21 }
   0x3   :  { %s506_s23 = smov 4  }
   0x4   :  { %32 = dma.hbm_to_vmem [thread:$0]  %s25_s19, 256, %s27_s21, [#allocation3], %s505_s22, %s505_s22, %s506_s23  }
   0x5   :  { %500 = dma.done.wait [#allocation3], 256  }
   0x6   :  { %501 = vsyncadd [#allocation3], 4294967040  ;;  %v420_v0 = vld [vmem:[#allocation2 + $0x8] sm:$0xff]  ;;  %v419_v1 = vld [vmem:[#allocation2] sm:$0xff]  ;;  %vm77_vm0 = vcmask 261120   ;;  %v98_v7 = vlaneseq  ;;  %s507_s23 = smov [#allocation5]  }
   0x7   :  { %87 = vmatpush.bf16.msra.mxu0 %v420_v0  ;;  %v56_v2 = vld [vmem:[%s648_s0] sm:$0xf]  ;;  %v428_v14 = vld [vmem:[%s653_s5 + $0x38] sm:$0xff]  ;;  %v427_v15 = vld [vmem:[%s653_s5 + $0x30] sm:$0xff]  ;;  %vm327_vm8 = vcmask 64512  }
   0x8   :  { %v441_v3 = vld [vmem:[%s650_s2] ss:$0 sm:$0xff]  ;;  %v99_v8 = vand.u32 127, %v98_v7  ;;  %200 = vmatpush.bf16.msra.mxu1 %v428_v14  ;;  %v426_v16 = vld [vmem:[%s653_s5 + $0x28] sm:$0xff]  ;;  %v424_v18 = vld [vmem:[%s653_s5 + $0x18] sm:$0xff] }
   0x9   :  { %v425_v17 = vld [vmem:[%s653_s5 + $0x20] sm:$0xff]  ;;  %v423_v19 = vld [vmem:[%s653_s5 + $0x10] sm:$0xff]  ;;  %v422_v20 = vld [vmem:[%s653_s5 + $0x8] sm:$0xff] }
   0xa   :  { %vm100_vm1 = vcmp.lt.s32.totalorder %v99_v8, 64  ;;  %v421_v21 = vld [vmem:[%s653_s5] sm:$0xff]  ;;  %v436_v48 = vld [vmem:[%s657_s9 + $0x38] sm:$0xff]  ;;  %v435_v49 = vld [vmem:[%s657_s9 + $0x30] sm:$0xff]  ;;  %s334_s5 = sshll.u32 %s507_s23, 4  ;;  %s335_s5 = int_to_ptr.vmem [resolvable:$true] %s334_s5 }
   0xb   :  { %88 = vmatpush.bf16.msra.mxu0 %v419_v1  ;;  %v442_v31 = vld [vmem:[%s651_s3] ss:$0 sm:$0xff]  ;;  %314 = vmatpush.bf16.msra.mxu2 %v436_v48  ;;  %v434_v50 = vld [vmem:[%s657_s9 + $0x28] sm:$0xff]  ;;  %v432_v52 = vld [vmem:[%s657_s9 + $0x18] sm:$0xff] }
   0xc   :  { %201 = vmatpush.bf16.msra.mxu1 %v427_v15  ;;  %v443_v34 = vld [vmem:[%s652_s4] ss:$0 sm:$0xff]  ;;  %v431_v53 = vld [vmem:[%s657_s9 + $0x10] sm:$0xff]  ;;  %v430_v54 = vld [vmem:[%s657_s9 + $0x8] sm:$0xff] }
   0xd   :  { %v444_v39 = vld [vmem:[%s654_s6] ss:$0 sm:$0xff] }
   0xe   :  { %354 = vmatmul.msk.bf16.vlgmr.msra.gmra.mxu0 %vm77_vm0, %v56_v2  ;;  %v433_v51 = vld [vmem:[%s657_s9 + $0x20] sm:$0xff] }
   0xf   :  { %315 = vmatpush.bf16.msra.mxu2 %v435_v49  ;;  %v429_v55 = vld [vmem:[%s657_s9] sm:$0xff] }
  0x10   :  { %202 = vmatpush.bf16.msra.mxu1 %v426_v16  ;;  %v445_v1 = vld [vmem:[%s655_s7] ss:$0 sm:$0xff]  ;;  %s336_s7 = sshll.u32 %s659_s11, 4  ;;  %s337_s7 = int_to_ptr.hbm [resolvable:$true] %s336_s7 }
  0x13   :  { %316 = vmatpush.bf16.msra.mxu2 %v434_v50 }
  0x14   :  { %203 = vmatpush.bf16.msra.mxu1 %v425_v17 }
  0x17   :  { %317 = vmatpush.bf16.msra.mxu2 %v433_v51 }
  0x18   :  { %204 = vmatpush.bf16.msra.mxu1 %v424_v18 }
  0x1b   :  { %318 = vmatpush.bf16.msra.mxu2 %v432_v52 }
  0x1c   :  { %205 = vmatpush.bf16.msra.mxu1 %v423_v19 }
  0x1f   :  { %319 = vmatpush.bf16.msra.mxu2 %v431_v53 }
  0x20   :  { %206 = vmatpush.bf16.msra.mxu1 %v422_v20 }
  0x23   :  { %320 = vmatpush.bf16.msra.mxu2 %v430_v54 }
  0x24   :  { %207 = vmatpush.bf16.msra.mxu1 %v421_v21 }
  0x27   :  { %321 = vmatpush.bf16.msra.mxu2 %v429_v55 }
  0x8b   :  { %v90_v4 = vpop.f32.mrf.mxu0 }
  0x8c   :  { %v91_v5 = vadd.f32 %v441_v3, %v90_v4  ;;  %v446_v4 = vld [vmem:[%s656_s8] ss:$0 sm:$0xff] }
  0x8e   :  { %94 = vadd.xlane.f32.xlu0 %v91_v5 }
  0x93   :  { %v92_v6 = vpop.f32.mrf.mxu0 }
 0x101   :  { %v95_v9 = vpop.xlane.xlu0 %94 }
 0x102   :  { %v96_v10 = vmul.f32 0.015625, %v95_v9  ;;  %v447_v9 = vld [vmem:[%s658_s10] ss:$0 sm:$0xff] }
 0x104   :  { %v97_v11 = vsub.f32 %v91_v5, %v96_v10 }
 0x106   :  { %v103_v12 = vsel %vm100_vm1, %v97_v11, 0.0 }
 0x107   :  { %v104_v13 = vmul.f32 %v103_v12, %v103_v12 }
 0x109   :  { %105 = vadd.xlane.f32.xlu0 %v104_v13 }
 0x17c   :  { %v106_v22 = vpop.xlane.xlu0 %105 }
 0x17d   :  { %v107_v23 = vmul.f32 0.015625, %v106_v22 }
 0x17f   :  { %v108_v24 = vadd.f32 1e-05, %v107_v23 }
 0x181   :  { %448 = vrsqrt.f32 %v108_v24  ;;  %vm115_vm3 = vweird.f32 %v108_v24 }
 0x187   :  { %v449_v25 = vpop.eup %448 }
 0x188   :  { %v110_v26 = vmul.f32 %v449_v25, %v108_v24  ;;  %vm116_vm2 = vweird.f32 %v449_v25 }
 0x189   :  { %vm117_vm4 = vmor %vm115_vm3, %vm116_vm2 }
 0x18a   :  { %v111_v27 = vmul.f32 %v449_v25, %v110_v26 }
 0x18c   :  { %v112_v28 = vmul.f32 0.5, %v111_v27 }
 0x18e   :  { %v113_v29 = vsub.f32 1.5, %v112_v28 }
 0x190   :  { %v114_v30 = vmul.f32 %v449_v25, %v113_v29 }
 0x192   :  { %v118_v32 = vsel %vm117_vm4, %v449_v25, %v114_v30 }
 0x193   :  { %v119_v33 = vmul.f32 %v118_v32, %v103_v12 }
 0x195   :  { %v124_v35 = vmul.f32 %v442_v31, %v119_v33 }
 0x197   :  { %v129_v36 = vadd.f32 %v443_v34, %v124_v35 }
 0x199   :  { %v130_v37 = vmax.f32 %v129_v36, 0.0 }
 0x19b   :  { %v131_v38 = vpack.c.bf16 %v130_v37, %v130_v37 }
 0x19d   :  { %208 = vmatmul.bf16.vlgmr.msra.gmra.mxu1 %v131_v38 }
 0x21a   :  { %v209_v40 = vpop.f32.mrf.mxu1 }
 0x21b   :  { %v210_v41 = vadd.f32 %v444_v39, %v209_v40 }
 0x21d   :  { %213 = vadd.xlane.f32.xlu1 %v210_v41 }
 0x222   :  { %v211_v42 = vpop.f32.mrf.mxu1 }
 0x290   :  { %v214_v43 = vpop.xlane.xlu1 %213 }
 0x291   :  { %v215_v44 = vmul.f32 0.015625, %v214_v43 }
 0x293   :  { %v216_v45 = vsub.f32 %v210_v41, %v215_v44 }
 0x295   :  { %v217_v46 = vsel %vm100_vm1, %v216_v45, 0.0 }
 0x296   :  { %v218_v47 = vmul.f32 %v217_v46, %v217_v46 }
 0x298   :  { %219 = vadd.xlane.f32.xlu1 %v218_v47 }
 0x30b   :  { %v220_v56 = vpop.xlane.xlu1 %219 }
 0x30c   :  { %v221_v57 = vmul.f32 0.015625, %v220_v56 }
 0x30e   :  { %v222_v58 = vadd.f32 1e-05, %v221_v57 }
 0x310   :  { %450 = vrsqrt.f32 %v222_v58  ;;  %vm229_vm6 = vweird.f32 %v222_v58 }
 0x316   :  { %v451_v59 = vpop.eup %450 }
 0x317   :  { %v224_v60 = vmul.f32 %v451_v59, %v222_v58  ;;  %vm230_vm5 = vweird.f32 %v451_v59 }
 0x318   :  { %vm231_vm7 = vmor %vm229_vm6, %vm230_vm5 }
 0x319   :  { %v225_v61 = vmul.f32 %v451_v59, %v224_v60 }
 0x31b   :  { %v226_v62 = vmul.f32 0.5, %v225_v61 }
 0x31d   :  { %v227_v63 = vsub.f32 1.5, %v226_v62 }
 0x31f   :  { %v228_v0 = vmul.f32 %v451_v59, %v227_v63 }
 0x321   :  { %v232_v2 = vsel %vm231_vm7, %v451_v59, %v228_v0 }
 0x322   :  { %v233_v3 = vmul.f32 %v232_v2, %v217_v46 }
 0x324   :  { %v238_v5 = vmul.f32 %v445_v1, %v233_v3 }
 0x326   :  { %v243_v6 = vadd.f32 %v446_v4, %v238_v5 }
 0x328   :  { %v244_v7 = vmax.f32 %v243_v6, 0.0 }
 0x32a   :  { %v245_v8 = vpack.c.bf16 %v244_v7, %v244_v7 }
 0x32c   :  { %322 = vmatmul.bf16.vlgmr.msra.gmra.mxu2 %v245_v8 }
 0x3af   :  { %v323_v10 = vpop.f32.mrf.mxu2 }
 0x3b0   :  { %v324_v11 = vadd.f32 %v447_v9, %v323_v10 }
 0x3b2   :  { %328 = vst.msk [vmem:[#allocation5] sm:$0xff] %vm327_vm8, %v324_v11 }
 0x3b3   :  { %339 = dma.vmem_to_hbm [thread:$0]  %s335_s5, 128, %s337_s7, [#allocation4]  }
 0x3b7   :  { %v325_v12 = vpop.f32.mrf.mxu2 }
 0x3b8   :  { %502 = dma.done.wait [#allocation4], 128  }
 0x3b9   :  { %503 = vsyncadd [#allocation4], 4294967168 }
 0x3ba   :  { %344 = vsyncpa [#allocation3], 1 }
 0x3bb   :  { %345 = vsyncpa [#allocation4], 1 }

</bundles_post_ra>
